<compile_context>
chip_gen: v5e
topology: v5e:2x2
jax: 0.10.0
libtpu: 0.0.40
codegen_flags: <defaults>
</compile_context>

<pallas_src>
import jax
import jax.numpy as jnp
from jax.experimental import pallas as pl
from jax.experimental.pallas import tpu as pltpu

_MIB = 1024 * 1024


def _round_up(n, m):
    return ((n + m - 1) // m) * m


def _vmem_capacity_bytes():
    try:
        return int(pltpu.get_tpu_info().vmem_capacity_bytes)
    except Exception:
        return 64 * _MIB  # v7x worst case; conservative everywhere


def _plan_tiles(batch, input_dim, x_itemsize):
    """Pick (tb, tk, num_k, vmem_limit) so double-buffered x tiles plus their
    f32 temporaries fit comfortably in VMEM on v5e/v6e/v7x while each tile
    stays in the multi-MiB range."""
    d_pad = _round_up(max(input_dim, 1), 128)  # lane-padded width

    vmem_cap = _vmem_capacity_bytes()  # 64 MiB (v7x) / 128 MiB (v5e/v6e)
    vmem_limit = max(32 * _MIB, min(vmem_cap - 16 * _MIB, 64 * _MIB))
    budget = vmem_limit - 8 * _MIB  # reserve for weight / output / acc / misc

    # Per lane-padded x-tile element: 2x native-dtype double buffer plus ~2x
    # f32 in-kernel temporaries (upcast copy + x*w product).
    per_elem = 2 * x_itemsize + 8
    max_tile_elems = max(budget // per_elem, 8 * 128)

    # Feature (K) chunking: keep the whole row when it fits with >=256-row
    # tiles; otherwise split D so every DMA block stays a few MiB.
    min_rows = 256
    if min_rows * d_pad <= max_tile_elems:
        tk = input_dim  # full row -> no mask needed
    else:
        tk = max(128, ((max_tile_elems // min_rows) // 128) * 128)
        tk = min(tk, d_pad)
    num_k = pl.cdiv(input_dim, tk)
    if num_k == 1:
        tk = input_dim

    tk_pad = _round_up(tk, 128)
    rows = max(max_tile_elems // tk_pad, 8)

    if rows >= batch:
        # Whole batch fits in one tile.  Still split into a few tiles so
        # v7x's two TensorCores both get work (and the pipeline overlaps),
        # as long as each tile keeps >=128 rows of real work.
        n_tiles = min(8, max(2, batch // 1024)) if batch >= 1024 else 1
        tb = _round_up(pl.cdiv(batch, n_tiles), 128) if n_tiles > 1 else batch
    else:
        tb = max(128, (rows // 128) * 128)

    return tb, tk, num_k, int(vmem_limit)


def _make_kernel(input_dim, tk, num_k):
    needs_mask = num_k > 1 and (input_dim % tk != 0)

    def kernel(x_ref, w_ref, b_ref, o_ref, acc_ref):
        # x_ref: (tb, tk) native dtype; w_ref: (1, tk) f32; b_ref: (1,1) f32 SMEM
        # o_ref: (1, tb) lane-dense output; acc_ref: (1, tb) f32 scratch.
        k = pl.program_id(1)

        @pl.when(k == 0)
        def _init():
            acc_ref[...] = jnp.zeros_like(acc_ref)

        x = x_ref[...].astype(jnp.float32)  # VPU path; no MXU for a 1-col output
        w = w_ref[...].astype(jnp.float32)  # (1, tk) broadcasts over rows
        prod = x * w
        if needs_mask:  # last K chunk is partial: zero out padded columns
            col = jax.lax.broadcasted_iota(jnp.int32, prod.shape, 1) + k * tk
            prod = jnp.where(col < input_dim, prod, 0.0)
        acc_ref[...] += jnp.sum(prod, axis=-1)[None, :]  # lane-dense (1, tb)

        @pl.when(k == num_k - 1)
        def _finish():
            o_ref[...] = (acc_ref[...] + b_ref[0, 0]).astype(o_ref.dtype)

    return kernel


def linear_regression_forward(x, weight, bias):
    """nn.Linear(input_dim, 1) forward: x (B, D), weight (1, D), bias (1,).

    Returns (B, 1) matching the PyTorch module."""
    B, D = x.shape
    out_dtype = x.dtype if jnp.issubdtype(x.dtype, jnp.floating) else jnp.float32

    w_row = weight.astype(jnp.float32)            # (1, D) streamed per K chunk
    b2d = bias.reshape(1, 1).astype(jnp.float32)  # scalar -> SMEM

    tb, tk, num_k, vmem_limit = _plan_tiles(B, D, x.dtype.itemsize)
    grid = (pl.cdiv(B, tb), num_k)  # reduction (K) axis last

    kernel = _make_kernel(D, tk, num_k)

    out = pl.pallas_call(
        kernel,
        out_shape=jax.ShapeDtypeStruct((1, B), out_dtype),  # lane-dense output slab
        grid_spec=pltpu.PrefetchScalarGridSpec(
            num_scalar_prefetch=0,
            grid=grid,
            in_specs=[
                pl.BlockSpec((tb, tk), lambda i, k: (i, k)),        # streamed x tiles
                pl.BlockSpec((1, tk), lambda i, k: (0, k)),         # weight row chunk
                pl.BlockSpec(memory_space=pltpu.MemorySpace.SMEM),  # scalar bias
            ],
            out_specs=pl.BlockSpec((1, tb), lambda i, k: (0, i)),   # resident across K
            scratch_shapes=[pltpu.VMEM((1, tb), jnp.float32)],      # f32 accumulator
        ),
        compiler_params=pltpu.CompilerParams(
            dimension_semantics=("parallel", "arbitrary"),
            vmem_limit_bytes=vmem_limit,
        ),
    )(x, w_row, b2d)

    return out.reshape(B, 1)  # (1, B) -> (B, 1): metadata-only reshape


if __name__ == "__main__":
    key = jax.random.PRNGKey(0)
    kx, kw, kb, kx2 = jax.random.split(key, 4)

    # --- Test 1: small shape matching the module's typical use --------------
    batch, input_dim = 8, 32
    x = jax.random.normal(kx, (batch, input_dim), dtype=jnp.float32)

    # Deterministic parameter init (mirrors nn.Linear's uniform(-1/sqrt(D), 1/sqrt(D))).
    bound = 1.0 / (input_dim ** 0.5)
    weight = jax.random.uniform(kw, (1, input_dim), minval=-bound, maxval=bound,
                                dtype=jnp.float32)
    bias = jax.random.uniform(kb, (1,), minval=-bound, maxval=bound,
                              dtype=jnp.float32)

    out = linear_regression_forward(x, weight, bias)
    jax.block_until_ready(out)
    ref = x @ weight.T + bias
    assert out.shape == (batch, 1)
    assert jnp.allclose(out, ref, atol=1e-5, rtol=1e-5)

    # --- Test 2: multi-tile batch (exercises megacore split + partial tile) -
    batch2, input_dim2 = 1300, 200
    x2 = jax.random.normal(kx2, (batch2, input_dim2), dtype=jnp.float32)
    bound2 = 1.0 / (input_dim2 ** 0.5)
    w2 = jax.random.uniform(kw, (1, input_dim2), minval=-bound2, maxval=bound2,
                            dtype=jnp.float32)
    b2 = jax.random.uniform(kb, (1,), minval=-bound2, maxval=bound2,
                            dtype=jnp.float32)

    out2 = linear_regression_forward(x2, w2, b2)
    jax.block_until_ready(out2)
    ref2 = x2 @ w2.T + b2
    assert out2.shape == (batch2, 1)
    assert jnp.allclose(out2, ref2, atol=1e-4, rtol=1e-4)

    print("KERNEL_OK")
</pallas_src>

<mosaic_0001>
module attributes {stable_mosaic.version = 11 : i64} {
  func.func @kernel(%arg0: i32, %arg1: i32, %arg2: memref<8x32xf32, #tpu.memory_space<vmem>>, %arg3: memref<1x32xf32, #tpu.memory_space<vmem>>, %arg4: memref<1x1xf32, #tpu.memory_space<smem>>, %arg5: memref<1x8xf32, #tpu.memory_space<vmem>>, %arg6: memref<1x8xf32, #tpu.memory_space<vmem>>) attributes {dimension_semantics = [#tpu.dimension_semantics<parallel>, #tpu.dimension_semantics<arbitrary>], iteration_bounds = array<i64: 1, 1>, scalar_prefetch = 0 : i64, scratch_operands = 1 : i64, tpu.core_type = #tpu.core_type<tc>, window_params = [{transform_indices = @transform_0, window_bounds = array<i64: 8, 32>}, {transform_indices = @transform_1, window_bounds = array<i64: 1, 32>}, {transform_indices = @transform_2, window_bounds = array<i64: 1, 1>}, {transform_indices = @transform_3, window_bounds = array<i64: 1, 8>}]} {
    %c0_i32 = arith.constant 0 : i32
    %0 = arith.cmpi eq, %arg1, %c0_i32 : i32
    %1 = arith.extui %0 : i1 to i32
    %c0_i32_0 = arith.constant 0 : i32
    %2 = arith.cmpi ne, %1, %c0_i32_0 : i32
    scf.if %2 {
      %cst_10 = arith.constant 0.000000e+00 : f32
      %15 = vector.broadcast %cst_10 : f32 to vector<1x8xf32>
      %c0_11 = arith.constant 0 : index
      %c0_12 = arith.constant 0 : index
      %16 = vector.load %arg6[%c0_11, %c0_12] : memref<1x8xf32, #tpu.memory_space<vmem>>, vector<1x8xf32>
      tpu.vector_store %arg6[%c0_11, %c0_12], %15 {strides = array<i32>} : memref<1x8xf32, #tpu.memory_space<vmem>>, vector<1x8xf32>,
    } else {
    }
    %c0 = arith.constant 0 : index
    %c0_1 = arith.constant 0 : index
    %3 = vector.load %arg2[%c0, %c0_1] : memref<8x32xf32, #tpu.memory_space<vmem>>, vector<8x32xf32>
    %c0_2 = arith.constant 0 : index
    %c0_3 = arith.constant 0 : index
    %4 = vector.load %arg3[%c0_2, %c0_3] : memref<1x32xf32, #tpu.memory_space<vmem>>, vector<1x32xf32>
    %5 = vector.broadcast %4 : vector<1x32xf32> to vector<8x32xf32>
    %6 = arith.mulf %3, %5 : vector<8x32xf32>
    %c0_4 = arith.constant 0 : index
    %c0_5 = arith.constant 0 : index
    %7 = vector.load %arg6[%c0_4, %c0_5] : memref<1x8xf32, #tpu.memory_space<vmem>>, vector<1x8xf32>
    %cst = arith.constant dense<0.000000e+00> : vector<8xf32>
    %8 = vector.multi_reduction <add>, %6, %cst [1] : vector<8x32xf32> to vector<8xf32>
    %9 = vector.shape_cast %8 : vector<8xf32> to vector<1x8xf32>
    %10 = arith.addf %7, %9 : vector<1x8xf32>
    %c0_6 = arith.constant 0 : index
    %c0_7 = arith.constant 0 : index
    %11 = vector.load %arg6[%c0_6, %c0_7] : memref<1x8xf32, #tpu.memory_space<vmem>>, vector<1x8xf32>
    tpu.vector_store %arg6[%c0_6, %c0_7], %10 {strides = array<i32>} : memref<1x8xf32, #tpu.memory_space<vmem>>, vector<1x8xf32>,
    %c0_i32_8 = arith.constant 0 : i32
    %12 = arith.cmpi eq, %arg1, %c0_i32_8 : i32
    %13 = arith.extui %12 : i1 to i32
    %c0_i32_9 = arith.constant 0 : i32
    %14 = arith.cmpi ne, %13, %c0_i32_9 : i32
    scf.if %14 {
      %c0_10 = arith.constant 0 : index
      %c0_11 = arith.constant 0 : index
      %15 = vector.load %arg6[%c0_10, %c0_11] : memref<1x8xf32, #tpu.memory_space<vmem>>, vector<1x8xf32>
      %c0_12 = arith.constant 0 : index
      %c0_13 = arith.constant 0 : index
      %16 = memref.load %arg4[%c0_12, %c0_13] : memref<1x1xf32, #tpu.memory_space<smem>>
      %17 = vector.broadcast %16 : f32 to vector<1x8xf32>
      %18 = arith.addf %15, %17 : vector<1x8xf32>
      %c0_14 = arith.constant 0 : index
      %c0_15 = arith.constant 0 : index
      %19 = vector.load %arg5[%c0_14, %c0_15] : memref<1x8xf32, #tpu.memory_space<vmem>>, vector<1x8xf32>
      tpu.vector_store %arg5[%c0_14, %c0_15], %18 {strides = array<i32>} : memref<1x8xf32, #tpu.memory_space<vmem>>, vector<1x8xf32>,
    } else {
    }
    return
  }
  func.func @transform_0(%arg0: i32, %arg1: i32) -> (i32, i32) {
    %c0_i32 = arith.constant 0 : i32
    return %arg0, %arg1 : i32, i32
  }
  func.func @transform_1(%arg0: i32, %arg1: i32) -> (i32, i32) {
    %c0_i32 = arith.constant 0 : i32
    %c0_i32_0 = arith.constant 0 : i32
    return %c0_i32, %arg1 : i32, i32
  }
  func.func @transform_2(%arg0: i32, %arg1: i32) -> (i32, i32) {
    %c0_i32 = arith.constant 0 : i32
    %c0_i32_0 = arith.constant 0 : i32
    %c0_i32_1 = arith.constant 0 : i32
    return %c0_i32, %c0_i32_0 : i32, i32
  }
  func.func @transform_3(%arg0: i32, %arg1: i32) -> (i32, i32) {
    %c0_i32 = arith.constant 0 : i32
    %c0_i32_0 = arith.constant 0 : i32
    return %c0_i32, %arg0 : i32, i32
  }
}

</mosaic_0001>

<bundles_post_ra>
// kernel: tpu_custom_call.1
= control target key start
LH: loop header
LB: loop body
LE: loop exit
PB: predicated region body
PF: predicated region fallthrough
CT: control target
= control target key end

     0   :  { %9 = vsyncpa [#allocation5], 0  ;;  %s204_s0 = inlined_call_operand.hbm [shape: f32[8,32], index: 0, kind: input, shape index: {}]   ;;  %s205_s1 = inlined_call_operand.vmem [shape: f32[1,32], index: 1, kind: input, shape index: {}]   ;;  %s206_s2 = inlined_call_operand.<no memory space> [shape: f32[1,1], index: 2, kind: input, shape index: {}]   ;;  %s207_s3 = inlined_call_operand.hbm [shape: f32[1,8], index: 3, kind: output, shape index: {}]  }
   0x1   :  { %10 = vsyncpa [#allocation6], 0  ;;  %s16_s14 = sshll.u32 %s204_s0, 4  ;;  %s165_s15 = smov [#allocation4]   ;;  %s17_s14 = int_to_ptr.hbm [resolvable:$true] %s16_s14 }
   0x2   :  { %s18_s16 = sshll.u32 %s165_s15, 4  ;;  %s19_s16 = int_to_ptr.vmem [resolvable:$true] %s18_s16 }
   0x3   :  { %21 = dma.hbm_to_vmem [thread:$0]  %s17_s14, 128, %s19_s16, [#allocation5]  }
   0x4   :  { %161 = dma.done.wait [#allocation5], 128  }
   0x5   :  { %162 = vsyncadd [#allocation5], 4294967168  ;;  %v36_v0 = vld [vmem:[#allocation4] sm:$0xff]  ;;  %v112_v1 = vld [vmem:[%s205_s1] ss:$0 sm:$0xff]  ;;  %vm43_vm0 = vcmask 261120   ;;  %v75_v16 = vlaneseq  ;;  %v87_v22 = vstv %s206_s2 }
   0x6   :  { %v41_v2 = vmul.f32 %v112_v1, %v36_v0  ;;  %v166_v4 = vmov 0   ;;  %vm34_vm1 = vcmask 57344   ;;  %v167_v5 = vmov 0.0   ;;  %s168_s19 = smov [#allocation7]   ;;  %s97_s23 = sshll.u32 %s207_s3, 4  ;;  %s98_s23 = int_to_ptr.hbm [resolvable:$true] %s97_s23 }
   0x7   :  { %111 = vset.pattern.permute.xlu0 %v166_v4  ;;  %35 = vst.msk [vmem:[#allocation2] sm:$0x1] %vm34_vm1, %v167_v5  ;;  %v76_v17 = vand.u32 127, %v75_v16  ;;  %s95_s20 = sshll.u32 %s168_s19, 4  ;;  %s96_s20 = int_to_ptr.vmem [resolvable:$true] %s95_s20 }
   0x8   :  { %v44_v3 = vsel %vm43_vm0, %v41_v2, 0.0 }
   0x9   :  { %45 = vadd.xlane.f32.xlu0 %v44_v3 }
   0xe   :  { %v42_v19 = vld [vmem:[#allocation2] sm:$0x1] }
  0x7c   :  { %v46_v6 = vpop.xlane.xlu0 %45 }
  0x7d   :  { %v48_v7 = vperm.slane %v46_v6, 0  ;;  %v49_v8 = vperm.slane %v46_v6, 1  ;;  %v50_v9 = vperm.slane %v46_v6, 2  ;;  %v51_v10 = vperm.slane %v46_v6, 3 }
  0x7e   :  { %v52_v11 = vperm.slane %v46_v6, 4  ;;  %v53_v12 = vperm.slane %v46_v6, 5  ;;  %v54_v13 = vperm.slane %v46_v6, 6  ;;  %v55_v14 = vperm.slane %v46_v6, 7 }
  0x7f   :  { %56 = vst [vmem:[#allocation1] ss:$9 sm:$0xff] %v48_v7 }
  0x80   :  { %58 = vst [vmem:[#allocation1 + $0x1] ss:$9 sm:$0xff] %v49_v8 }
  0x81   :  { %60 = vst [vmem:[#allocation1 + $0x2] ss:$9 sm:$0xff] %v50_v9 }
  0x82   :  { %62 = vst [vmem:[#allocation1 + $0x3] ss:$9 sm:$0xff] %v51_v10 }
  0x83   :  { %64 = vst [vmem:[#allocation1 + $0x4] ss:$9 sm:$0xff] %v52_v11 }
  0x84   :  { %66 = vst [vmem:[#allocation1 + $0x5] ss:$9 sm:$0xff] %v53_v12 }
  0x85   :  { %68 = vst [vmem:[#allocation1 + $0x6] ss:$9 sm:$0xff] %v54_v13 }
  0x86   :  { %70 = vst [vmem:[#allocation1 + $0x7] ss:$9 sm:$0xff] %v55_v14 }
  0x8d   :  { %v71_v15 = vld [vmem:[#allocation1] sm:$0xff] }
  0x8e   :  { %73 = vperm.xlu0 %111, %v71_v15  }
 0x100   :  { %v74_v18 = vpop.permute.xlu0 %73 }
 0x101   :  { %v77_v20 = vperm.slane %v74_v18, %v76_v17 }
 0x103   :  { %v79_v21 = vadd.f32 %v77_v20, %v42_v19 }
 0x105   :  { %81 = vst.msk [vmem:[#allocation2] sm:$0x1] %vm34_vm1, %v79_v21 }
 0x10c   :  { %v85_v23 = vld [vmem:[#allocation2] sm:$0x1] }
 0x10d   :  { %v88_v24 = vadd.f32 %v87_v22, %v85_v23 }
 0x10f   :  { %89 = vst.msk [vmem:[#allocation7] sm:$0x1] %vm34_vm1, %v88_v24 }
 0x110   :  { %100 = dma.vmem_to_hbm [thread:$0]  %s96_s20, 16, %s98_s23, [#allocation6]  }
 0x111   :  { %163 = dma.done.wait [#allocation6], 16  }
 0x112   :  { %164 = vsyncadd [#allocation6], 4294967280 }
 0x113   :  { %105 = vsyncpa [#allocation5], 1 }
 0x114   :  { %106 = vsyncpa [#allocation6], 1 }

</bundles_post_ra>
